<compile_context>
chip_gen: v7x
topology: tpu7x:2x2x1
jax: 0.10.0
libtpu: 0.0.40
codegen_flags: <defaults>
</compile_context>

<pallas_src>
import functools

import jax
import jax.numpy as jnp
from jax.experimental import pallas as pl
from jax.experimental.pallas import tpu as pltpu

ENC_DIM = 10
LANE = 128


def _round_up(x, m):
    return ((x + m - 1) // m) * m


def autoencoder_kernel(x_ref,
                       w1_ref, b1_ref, w2_ref, b2_ref,
                       w3p_ref, b3p_ref,          # column-padded to 128 (enc)
                       w34_ref, b34_ref,          # fused w3 @ w4 (decoder path)
                       w5_ref, b5_ref,
                       w6p_ref, b6p_ref,          # column-padded to F_pad (dec)
                       enc_ref, dec_ref):
    x = x_ref[...]

    # ---- encoder trunk ----
    h = jnp.dot(x, w1_ref[...], preferred_element_type=jnp.float32) + b1_ref[...]
    h = jnp.maximum(h, 0.0)                                           # ReLU
    h = jnp.dot(h, w2_ref[...], preferred_element_type=jnp.float32) + b2_ref[...]
    h = jnp.maximum(h, 0.0)                                           # ReLU

    # ---- encoder output (lane-dense: zero-padded to 128 columns) ----
    enc = jnp.dot(h, w3p_ref[...], preferred_element_type=jnp.float32) + b3p_ref[...]
    enc_ref[...] = enc.astype(enc_ref.dtype)

    # ---- decoder (first dot fused off the critical path: h@(w3@w4) == enc@w4) ----
    d = jnp.dot(h, w34_ref[...], preferred_element_type=jnp.float32) + b34_ref[...]
    d = jnp.maximum(d, 0.0)                                           # ReLU
    d = jnp.dot(d, w5_ref[...], preferred_element_type=jnp.float32) + b5_ref[...]
    d = jnp.maximum(d, 0.0)                                           # ReLU
    d = jnp.dot(d, w6p_ref[...], preferred_element_type=jnp.float32) + b6p_ref[...]
    dec_ref[...] = jnp.tanh(d).astype(dec_ref.dtype)                  # Tanh (pad cols -> tanh(0)=0)


@functools.partial(jax.jit, static_argnames=("tb",))
def autoencoder_forward(x, params, *, tb=512):
    """x: (B, num_features) float32. params: weights (in,out) / biases (1,out)."""
    B, F = x.shape

    # Batch tile: large to amortize per-step overhead, multiple of 8, no bigger
    # than the (8-rounded) batch itself.
    TB = min(tb, _round_up(B, 8))
    B_pad = _round_up(B, TB)
    F_pad = _round_up(F, LANE)      # lane-dense decoder output width
    ENC_PAD = LANE                  # lane-dense encoder output width

    if B_pad != B:
        x = jnp.pad(x, ((0, B_pad - B), (0, 0)))

    # Lane-dense output padding (zero columns contribute zeros / tanh(0)=0).
    w3p = jnp.pad(params["w3"], ((0, 0), (0, ENC_PAD - ENC_DIM)))
    b3p = jnp.pad(params["b3"], ((0, 0), (0, ENC_PAD - ENC_DIM)))
    w6p = jnp.pad(params["w6"], ((0, 0), (0, F_pad - F)))
    b6p = jnp.pad(params["b6"], ((0, 0), (0, F_pad - F)))
    # Fuse the tiny K=10 matmul into the wrapper (off the per-tile dep chain).
    w34 = params["w3"] @ params["w4"]
    b34 = params["b3"] @ params["w4"] + params["b4"]

    flat_args = (x,
                 params["w1"], params["b1"], params["w2"], params["b2"],
                 w3p, b3p, w34, b34,
                 params["w5"], params["b5"], w6p, b6p)

    grid = (B_pad // TB,)
    batch_map = lambda i: (i, 0)
    resident = lambda i: (0, 0)     # weights/biases stay in VMEM across steps

    in_specs = [pl.BlockSpec((TB, F), batch_map)] + [
        pl.BlockSpec(w.shape, resident) for w in flat_args[1:]
    ]
    out_specs = (pl.BlockSpec((TB, ENC_PAD), batch_map),
                 pl.BlockSpec((TB, F_pad), batch_map))
    out_shape = (jax.ShapeDtypeStruct((B_pad, ENC_PAD), jnp.float32),
                 jax.ShapeDtypeStruct((B_pad, F_pad), jnp.float32))

    flops_per_row = 2 * (F * 40 + 40 * 20 + 20 * ENC_PAD + 20 * 20 + 20 * 40 + 40 * F_pad)
    weight_bytes = 4 * sum(int(w.size) for w in flat_args[1:])
    cost = pl.CostEstimate(
        flops=B_pad * flops_per_row,
        transcendentals=B_pad * F_pad,
        bytes_accessed=4 * B_pad * (F + ENC_PAD + F_pad) + weight_bytes,
    )

    enc_pad, dec_pad = pl.pallas_call(
        autoencoder_kernel,
        grid=grid,
        in_specs=in_specs,
        out_specs=out_specs,
        out_shape=out_shape,
        compiler_params=pltpu.CompilerParams(
            dimension_semantics=("parallel",),       # 2x on v7x's dual TensorCores
            vmem_limit_bytes=32 * 1024 * 1024,       # ample; safe on v7x's 64 MiB VMEM
        ),
        cost_estimate=cost,
    )(*flat_args)

    return enc_pad[:B, :ENC_DIM], dec_pad[:B, :F]


def init_params(key, num_features):
    """Deterministic synthetic params matching nn.Linear shapes (transposed to (in,out))."""
    dims = [(num_features, 40), (40, 20), (20, ENC_DIM),
            (ENC_DIM, 20), (20, 40), (40, num_features)]
    params = {}
    for i, (fan_in, fan_out) in enumerate(dims, start=1):
        key, kw, kb = jax.random.split(key, 3)
        bound = 1.0 / jnp.sqrt(fan_in)
        params[f"w{i}"] = jax.random.uniform(
            kw, (fan_in, fan_out), jnp.float32, -bound, bound)
        # bias kept 2D (1, out) for TPU-friendly layout; broadcasts over batch.
        params[f"b{i}"] = jax.random.uniform(
            kb, (1, fan_out), jnp.float32, -bound, bound)
    return params


def reference_forward(x, params):
    h = jnp.maximum(x @ params["w1"] + params["b1"], 0.0)
    h = jnp.maximum(h @ params["w2"] + params["b2"], 0.0)
    enc = h @ params["w3"] + params["b3"]
    d = jnp.maximum(enc @ params["w4"] + params["b4"], 0.0)
    d = jnp.maximum(d @ params["w5"] + params["b5"], 0.0)
    dec = jnp.tanh(d @ params["w6"] + params["b6"])
    return enc, dec


if __name__ == "__main__":
    key = jax.random.PRNGKey(0)
    key, kx, kp = jax.random.split(key, 3)

    batch = 8
    num_features = 32
    x = jax.random.normal(kx, (batch, num_features), jnp.float32)
    params = init_params(kp, num_features)

    enc, dec = autoencoder_forward(x, params)
    jax.block_until_ready((enc, dec))

    enc_ref, dec_ref = reference_forward(x, params)
    assert enc.shape == (batch, ENC_DIM) and dec.shape == (batch, num_features)
    # 1e-4 tolerance: the wrapper-side w3@w4 fusion changes f32 rounding slightly.
    assert jnp.allclose(enc, enc_ref, atol=1e-4, rtol=1e-4)
    assert jnp.allclose(dec, dec_ref, atol=1e-4, rtol=1e-4)

    print("KERNEL_OK")
</pallas_src>

<mosaic_0001>
module attributes {stable_mosaic.version = 11 : i64} {
  func.func @autoencoder_kernel(%arg0: i32, %arg1: memref<8x32xf32, #tpu.memory_space<vmem>>, %arg2: memref<32x40xf32, #tpu.memory_space<vmem>>, %arg3: memref<1x40xf32, #tpu.memory_space<vmem>>, %arg4: memref<40x20xf32, #tpu.memory_space<vmem>>, %arg5: memref<1x20xf32, #tpu.memory_space<vmem>>, %arg6: memref<20x128xf32, #tpu.memory_space<vmem>>, %arg7: memref<1x128xf32, #tpu.memory_space<vmem>>, %arg8: memref<20x20xf32, #tpu.memory_space<vmem>>, %arg9: memref<1x20xf32, #tpu.memory_space<vmem>>, %arg10: memref<20x40xf32, #tpu.memory_space<vmem>>, %arg11: memref<1x40xf32, #tpu.memory_space<vmem>>, %arg12: memref<40x128xf32, #tpu.memory_space<vmem>>, %arg13: memref<1x128xf32, #tpu.memory_space<vmem>>, %arg14: memref<8x128xf32, #tpu.memory_space<vmem>>, %arg15: memref<8x128xf32, #tpu.memory_space<vmem>>) attributes {dimension_semantics = [#tpu.dimension_semantics<parallel>], iteration_bounds = array<i64: 1>, scalar_prefetch = 0 : i64, scratch_operands = 0 : i64, tpu.core_type = #tpu.core_type<tc>, window_params = [{transform_indices = @transform_0, window_bounds = array<i64: 8, 32>}, {pipeline_mode = #tpu.pipeline_mode<synchronous>, transform_indices = @transform_1, window_bounds = array<i64: 32, 40>}, {pipeline_mode = #tpu.pipeline_mode<synchronous>, transform_indices = @transform_2, window_bounds = array<i64: 1, 40>}, {pipeline_mode = #tpu.pipeline_mode<synchronous>, transform_indices = @transform_3, window_bounds = array<i64: 40, 20>}, {pipeline_mode = #tpu.pipeline_mode<synchronous>, transform_indices = @transform_4, window_bounds = array<i64: 1, 20>}, {pipeline_mode = #tpu.pipeline_mode<synchronous>, transform_indices = @transform_5, window_bounds = array<i64: 20, 128>}, {pipeline_mode = #tpu.pipeline_mode<synchronous>, transform_indices = @transform_6, window_bounds = array<i64: 1, 128>}, {pipeline_mode = #tpu.pipeline_mode<synchronous>, transform_indices = @transform_7, window_bounds = array<i64: 20, 20>}, {pipeline_mode = #tpu.pipeline_mode<synchronous>, transform_indices = @transform_8, window_bounds = array<i64: 1, 20>}, {pipeline_mode = #tpu.pipeline_mode<synchronous>, transform_indices = @transform_9, window_bounds = array<i64: 20, 40>}, {pipeline_mode = #tpu.pipeline_mode<synchronous>, transform_indices = @transform_10, window_bounds = array<i64: 1, 40>}, {pipeline_mode = #tpu.pipeline_mode<synchronous>, transform_indices = @transform_11, window_bounds = array<i64: 40, 128>}, {pipeline_mode = #tpu.pipeline_mode<synchronous>, transform_indices = @transform_12, window_bounds = array<i64: 1, 128>}, {transform_indices = @transform_13, window_bounds = array<i64: 8, 128>}, {transform_indices = @transform_14, window_bounds = array<i64: 8, 128>}]} {
    %c0 = arith.constant 0 : index
    %c0_0 = arith.constant 0 : index
    %0 = vector.load %arg1[%c0, %c0_0] : memref<8x32xf32, #tpu.memory_space<vmem>>, vector<8x32xf32>
    %c0_1 = arith.constant 0 : index
    %c0_2 = arith.constant 0 : index
    %1 = vector.load %arg2[%c0_1, %c0_2] : memref<32x40xf32, #tpu.memory_space<vmem>>, vector<32x40xf32>
    %cst = arith.constant dense<0.000000e+00> : vector<8x40xf32>
    %2 = tpu.matmul %0, %1, %cst {dimension_numbers = #tpu.dot_dimension_numbers<[1], [0], [0], [1], [0, 0, 1, 1], [], []>} : vector<8x32xf32>, vector<32x40xf32>, vector<8x40xf32> -> vector<8x40xf32>
    %c0_3 = arith.constant 0 : index
    %c0_4 = arith.constant 0 : index
    %3 = vector.load %arg3[%c0_3, %c0_4] : memref<1x40xf32, #tpu.memory_space<vmem>>, vector<1x40xf32>
    %4 = vector.broadcast %3 : vector<1x40xf32> to vector<8x40xf32>
    %5 = arith.addf %2, %4 : vector<8x40xf32>
    %cst_5 = arith.constant 0.000000e+00 : f32
    %6 = vector.broadcast %cst_5 : f32 to vector<8x40xf32>
    %7 = arith.maximumf %5, %6 : vector<8x40xf32>
    %c0_6 = arith.constant 0 : index
    %c0_7 = arith.constant 0 : index
    %8 = vector.load %arg4[%c0_6, %c0_7] : memref<40x20xf32, #tpu.memory_space<vmem>>, vector<40x20xf32>
    %cst_8 = arith.constant dense<0.000000e+00> : vector<8x20xf32>
    %9 = tpu.matmul %7, %8, %cst_8 {dimension_numbers = #tpu.dot_dimension_numbers<[1], [0], [0], [1], [0, 0, 1, 1], [], []>} : vector<8x40xf32>, vector<40x20xf32>, vector<8x20xf32> -> vector<8x20xf32>
    %c0_9 = arith.constant 0 : index
    %c0_10 = arith.constant 0 : index
    %10 = vector.load %arg5[%c0_9, %c0_10] : memref<1x20xf32, #tpu.memory_space<vmem>>, vector<1x20xf32>
    %11 = vector.broadcast %10 : vector<1x20xf32> to vector<8x20xf32>
    %12 = arith.addf %9, %11 : vector<8x20xf32>
    %cst_11 = arith.constant 0.000000e+00 : f32
    %13 = vector.broadcast %cst_11 : f32 to vector<8x20xf32>
    %14 = arith.maximumf %12, %13 : vector<8x20xf32>
    %c0_12 = arith.constant 0 : index
    %c0_13 = arith.constant 0 : index
    %15 = vector.load %arg6[%c0_12, %c0_13] : memref<20x128xf32, #tpu.memory_space<vmem>>, vector<20x128xf32>
    %cst_14 = arith.constant dense<0.000000e+00> : vector<8x128xf32>
    %16 = tpu.matmul %14, %15, %cst_14 {dimension_numbers = #tpu.dot_dimension_numbers<[1], [0], [0], [1], [0, 0, 1, 1], [], []>} : vector<8x20xf32>, vector<20x128xf32>, vector<8x128xf32> -> vector<8x128xf32>
    %c0_15 = arith.constant 0 : index
    %c0_16 = arith.constant 0 : index
    %17 = vector.load %arg7[%c0_15, %c0_16] : memref<1x128xf32, #tpu.memory_space<vmem>>, vector<1x128xf32>
    %18 = vector.broadcast %17 : vector<1x128xf32> to vector<8x128xf32>
    %19 = arith.addf %16, %18 : vector<8x128xf32>
    %c0_17 = arith.constant 0 : index
    %c0_18 = arith.constant 0 : index
    %20 = vector.load %arg14[%c0_17, %c0_18] : memref<8x128xf32, #tpu.memory_space<vmem>>, vector<8x128xf32>
    tpu.vector_store %arg14[%c0_17, %c0_18], %19 {strides = array<i32>} : memref<8x128xf32, #tpu.memory_space<vmem>>, vector<8x128xf32>,
    %c0_19 = arith.constant 0 : index
    %c0_20 = arith.constant 0 : index
    %21 = vector.load %arg8[%c0_19, %c0_20] : memref<20x20xf32, #tpu.memory_space<vmem>>, vector<20x20xf32>
    %cst_21 = arith.constant dense<0.000000e+00> : vector<8x20xf32>
    %22 = tpu.matmul %14, %21, %cst_21 {dimension_numbers = #tpu.dot_dimension_numbers<[1], [0], [0], [1], [0, 0, 1, 1], [], []>} : vector<8x20xf32>, vector<20x20xf32>, vector<8x20xf32> -> vector<8x20xf32>
    %c0_22 = arith.constant 0 : index
    %c0_23 = arith.constant 0 : index
    %23 = vector.load %arg9[%c0_22, %c0_23] : memref<1x20xf32, #tpu.memory_space<vmem>>, vector<1x20xf32>
    %24 = vector.broadcast %23 : vector<1x20xf32> to vector<8x20xf32>
    %25 = arith.addf %22, %24 : vector<8x20xf32>
    %cst_24 = arith.constant 0.000000e+00 : f32
    %26 = vector.broadcast %cst_24 : f32 to vector<8x20xf32>
    %27 = arith.maximumf %25, %26 : vector<8x20xf32>
    %c0_25 = arith.constant 0 : index
    %c0_26 = arith.constant 0 : index
    %28 = vector.load %arg10[%c0_25, %c0_26] : memref<20x40xf32, #tpu.memory_space<vmem>>, vector<20x40xf32>
    %cst_27 = arith.constant dense<0.000000e+00> : vector<8x40xf32>
    %29 = tpu.matmul %27, %28, %cst_27 {dimension_numbers = #tpu.dot_dimension_numbers<[1], [0], [0], [1], [0, 0, 1, 1], [], []>} : vector<8x20xf32>, vector<20x40xf32>, vector<8x40xf32> -> vector<8x40xf32>
    %c0_28 = arith.constant 0 : index
    %c0_29 = arith.constant 0 : index
    %30 = vector.load %arg11[%c0_28, %c0_29] : memref<1x40xf32, #tpu.memory_space<vmem>>, vector<1x40xf32>
    %31 = vector.broadcast %30 : vector<1x40xf32> to vector<8x40xf32>
    %32 = arith.addf %29, %31 : vector<8x40xf32>
    %cst_30 = arith.constant 0.000000e+00 : f32
    %33 = vector.broadcast %cst_30 : f32 to vector<8x40xf32>
    %34 = arith.maximumf %32, %33 : vector<8x40xf32>
    %c0_31 = arith.constant 0 : index
    %c0_32 = arith.constant 0 : index
    %35 = vector.load %arg12[%c0_31, %c0_32] : memref<40x128xf32, #tpu.memory_space<vmem>>, vector<40x128xf32>
    %cst_33 = arith.constant dense<0.000000e+00> : vector<8x128xf32>
    %36 = tpu.matmul %34, %35, %cst_33 {dimension_numbers = #tpu.dot_dimension_numbers<[1], [0], [0], [1], [0, 0, 1, 1], [], []>} : vector<8x40xf32>, vector<40x128xf32>, vector<8x128xf32> -> vector<8x128xf32>
    %c0_34 = arith.constant 0 : index
    %c0_35 = arith.constant 0 : index
    %37 = vector.load %arg13[%c0_34, %c0_35] : memref<1x128xf32, #tpu.memory_space<vmem>>, vector<1x128xf32>
    %38 = vector.broadcast %37 : vector<1x128xf32> to vector<8x128xf32>
    %39 = arith.addf %36, %38 : vector<8x128xf32>
    %40 = math.tanh %39 : vector<8x128xf32>
    %c0_36 = arith.constant 0 : index
    %c0_37 = arith.constant 0 : index
    %41 = vector.load %arg15[%c0_36, %c0_37] : memref<8x128xf32, #tpu.memory_space<vmem>>, vector<8x128xf32>
    tpu.vector_store %arg15[%c0_36, %c0_37], %40 {strides = array<i32>} : memref<8x128xf32, #tpu.memory_space<vmem>>, vector<8x128xf32>,
    return
  }
  func.func @transform_0(%arg0: i32) -> (i32, i32) {
    %c0_i32 = arith.constant 0 : i32
    %c0_i32_0 = arith.constant 0 : i32
    return %arg0, %c0_i32 : i32, i32
  }
  func.func @transform_1(%arg0: i32) -> (i32, i32) {
    %c0_i32 = arith.constant 0 : i32
    %c0_i32_0 = arith.constant 0 : i32
    %c0_i32_1 = arith.constant 0 : i32
    return %c0_i32, %c0_i32_0 : i32, i32
  }
  func.func @transform_2(%arg0: i32) -> (i32, i32) {
    %c0_i32 = arith.constant 0 : i32
    %c0_i32_0 = arith.constant 0 : i32
    %c0_i32_1 = arith.constant 0 : i32
    return %c0_i32, %c0_i32_0 : i32, i32
  }
  func.func @transform_3(%arg0: i32) -> (i32, i32) {
    %c0_i32 = arith.constant 0 : i32
    %c0_i32_0 = arith.constant 0 : i32
    %c0_i32_1 = arith.constant 0 : i32
    return %c0_i32, %c0_i32_0 : i32, i32
  }
  func.func @transform_4(%arg0: i32) -> (i32, i32) {
    %c0_i32 = arith.constant 0 : i32
    %c0_i32_0 = arith.constant 0 : i32
    %c0_i32_1 = arith.constant 0 : i32
    return %c0_i32, %c0_i32_0 : i32, i32
  }
  func.func @transform_5(%arg0: i32) -> (i32, i32) {
    %c0_i32 = arith.constant 0 : i32
    %c0_i32_0 = arith.constant 0 : i32
    %c0_i32_1 = arith.constant 0 : i32
    return %c0_i32, %c0_i32_0 : i32, i32
  }
  func.func @transform_6(%arg0: i32) -> (i32, i32) {
    %c0_i32 = arith.constant 0 : i32
    %c0_i32_0 = arith.constant 0 : i32
    %c0_i32_1 = arith.constant 0 : i32
    return %c0_i32, %c0_i32_0 : i32, i32
  }
  func.func @transform_7(%arg0: i32) -> (i32, i32) {
    %c0_i32 = arith.constant 0 : i32
    %c0_i32_0 = arith.constant 0 : i32
    %c0_i32_1 = arith.constant 0 : i32
    return %c0_i32, %c0_i32_0 : i32, i32
  }
  func.func @transform_8(%arg0: i32) -> (i32, i32) {
    %c0_i32 = arith.constant 0 : i32
    %c0_i32_0 = arith.constant 0 : i32
    %c0_i32_1 = arith.constant 0 : i32
    return %c0_i32, %c0_i32_0 : i32, i32
  }
  func.func @transform_9(%arg0: i32) -> (i32, i32) {
    %c0_i32 = arith.constant 0 : i32
    %c0_i32_0 = arith.constant 0 : i32
    %c0_i32_1 = arith.constant 0 : i32
    return %c0_i32, %c0_i32_0 : i32, i32
  }
  func.func @transform_10(%arg0: i32) -> (i32, i32) {
    %c0_i32 = arith.constant 0 : i32
    %c0_i32_0 = arith.constant 0 : i32
    %c0_i32_1 = arith.constant 0 : i32
    return %c0_i32, %c0_i32_0 : i32, i32
  }
  func.func @transform_11(%arg0: i32) -> (i32, i32) {
    %c0_i32 = arith.constant 0 : i32
    %c0_i32_0 = arith.constant 0 : i32
    %c0_i32_1 = arith.constant 0 : i32
    return %c0_i32, %c0_i32_0 : i32, i32
  }
  func.func @transform_12(%arg0: i32) -> (i32, i32) {
    %c0_i32 = arith.constant 0 : i32
    %c0_i32_0 = arith.constant 0 : i32
    %c0_i32_1 = arith.constant 0 : i32
    return %c0_i32, %c0_i32_0 : i32, i32
  }
  func.func @transform_13(%arg0: i32) -> (i32, i32) {
    %c0_i32 = arith.constant 0 : i32
    %c0_i32_0 = arith.constant 0 : i32
    return %arg0, %c0_i32 : i32, i32
  }
  func.func @transform_14(%arg0: i32) -> (i32, i32) {
    %c0_i32 = arith.constant 0 : i32
    %c0_i32_0 = arith.constant 0 : i32
    return %arg0, %c0_i32 : i32, i32
  }
}

</mosaic_0001>

<bundles_post_ra>
// kernel: autoencoder_forward.1
= control target key start
LH: loop header
LB: loop body
LE: loop exit
PB: predicated region body
PF: predicated region fallthrough
CT: control target
= control target key end

     0   :  { %20 = vsyncpa [#allocation3], 0  ;;  %v787_v3 = vmov 0.0|0.0   ;;  %vm788_vm0 = vmmov 0   ;;  %v789_v6 = vmov 0.0   ;;  %s1015_s0 = inlined_call_operand.vmem [shape: f32[8,32], index: 0, kind: input, shape index: {}]   ;;  %s1016_s1 = inlined_call_operand.vmem [shape: f32[32,40], index: 1, kind: input, shape index: {}]   ;;  %s1017_s2 = inlined_call_operand.vmem [shape: f32[1,40], index: 2, kind: input, shape index: {}]   ;;  %s1018_s3 = inlined_call_operand.vmem [shape: f32[40,20], index: 3, kind: input, shape index: {}]   ;;  %s1019_s4 = inlined_call_operand.vmem [shape: f32[1,20], index: 4, kind: input, shape index: {}]   ;;  %s1020_s5 = inlined_call_operand.vmem [shape: f32[20,128], index: 5, kind: input, shape index: {}]   ;;  %s1021_s6 = inlined_call_operand.vmem [shape: f32[1,128], index: 6, kind: input, shape index: {}]   ;;  %s1022_s7 = inlined_call_operand.vmem [shape: f32[20,20], index: 7, kind: input, shape index: {}]   ;;  %s1023_s8 = inlined_call_operand.vmem [shape: f32[1,20], index: 8, kind: input, shape index: {}]   ;;  %s1024_s9 = inlined_call_operand.vmem [shape: f32[20,40], index: 9, kind: input, shape index: {}]   ;;  %s1025_s10 = inlined_call_operand.vmem [shape: f32[1,40], index: 10, kind: input, shape index: {}]   ;;  %s1026_s11 = inlined_call_operand.vmem [shape: f32[40,128], index: 11, kind: input, shape index: {}]   ;;  %s1027_s12 = inlined_call_operand.vmem [shape: f32[1,128], index: 12, kind: input, shape index: {}]   ;;  %s1028_s13 = inlined_call_operand.hbm [shape: f32[8,128], index: 13, kind: output, shape index: {0}]   ;;  %s1029_s14 = inlined_call_operand.hbm [shape: f32[8,128], index: 14, kind: output, shape index: {1}]  }
   0x1   :  { %v49_v0 = vld [vmem:[%s1016_s1] sm:$0xff]  ;;  %v50_v1 = vld [vmem:[%s1016_s1 + $0x8] sm:$0xff]  ;;  %v51_v2 = vld [vmem:[%s1016_s1 + $0x10] sm:$0xff]  ;;  %705 = vmatprep.subr.bf16.mxu0 %v787_v3  ;;  %649 = vmatprep.mubr.msk.f32.mxu0 %vm788_vm0, %v789_v6 }
   0x2   :  { %v706_v4 = vpack.c.bf16 %v50_v1, %v49_v0  ;;  %v52_v5 = vld [vmem:[%s1016_s1 + $0x18] sm:$0xff]  ;;  %v135_v7 = vld [vmem:[%s1018_s3] sm:$0xff]  ;;  %711 = vmatprep.subr.bf16.mxu1 %v787_v3  ;;  %v136_v8 = vld [vmem:[%s1018_s3 + $0x8] sm:$0xff]  ;;  %662 = vmatprep.mubr.msk.f32.mxu1 %vm788_vm0, %v789_v6 }
   0x3   :  { %21 = vsyncpa [#allocation5], 0  ;;  %v709_v9 = vpack.c.bf16 %v52_v5, %v51_v2  ;;  %v712_v10 = vpack.c.bf16 %v136_v8, %v135_v7  ;;  %v48_v11 = vld [vmem:[%s1015_s0] sm:$0xff]  ;;  %vm60_vm1 = vcmask 261120   ;;  %v137_v12 = vld [vmem:[%s1018_s3 + $0x10] sm:$0xff]  ;;  %vm147_vm2 = vcmask 326656  }
   0x4   :  { %707 = vmatpush3.bf16.msra.mxu0 %v706_v4  ;;  %v138_v13 = vld [vmem:[%s1018_s3 + $0x18] sm:$0xff]  ;;  %v139_v15 = vld [vmem:[%s1018_s3 + $0x20] sm:$0xff]  ;;  %v312_v18 = vld [vmem:[%s1022_s7 + $0x8] sm:$0xff]  ;;  %vm236_vm3 = vcmask 1043456   ;;  %vm232_vm4 = vcmask 162816   ;;  %s790_s1 = smov [#allocation2]  }
   0x5   :  { %708 = vmatprep.subr.bf16.mxu0 %v787_v3  ;;  %713 = vmatpush3.bf16.msra.mxu1 %v712_v10  ;;  %v715_v14 = vpack.c.bf16 %v138_v13, %v137_v12  ;;  %v597_v16 = vld [vmem:[%s1017_s2] ss:$0 sm:$0xff]  ;;  %v223_v25 = vld [vmem:[%s1020_s5 + $0x8] sm:$0xff]  ;;  %v313_v27 = vld [vmem:[%s1022_s7 + $0x10] sm:$0xf]  ;;  %s575_s25 = sshll.u32 %s790_s1, 4  ;;  %s576_s25 = int_to_ptr.vmem [resolvable:$true] %s575_s25 }
   0x6   :  { %714 = vmatprep.subr.bf16.mxu1 %v787_v3  ;;  %v311_v17 = vld [vmem:[%s1022_s7] sm:$0xff]  ;;  %v224_v28 = vld [vmem:[%s1020_s5 + $0x10] sm:$0xf]  ;;  %v396_v31 = vld [vmem:[%s1024_s9 + $0x8] sm:$0xff]  ;;  %s739_s26 = scalar_lea.vmem %s576_s25, 128  ;;  %p744_p1 = scmp.lt.s32.totalorder %s576_s25, %s576_s25 }
   0x7   :  { %v721_v22 = vpack.c.bf16 %v312_v18, %v311_v17  ;;  %v222_v24 = vld [vmem:[%s1020_s5] sm:$0xff]  ;;  %v397_v37 = vld [vmem:[%s1024_s9 + $0x10] sm:$0xf]  ;;  %v483_v39 = vld [vmem:[%s1026_s11 + $0x8] sm:$0xff]  ;;  %p740_p0 = scmp.ne.s32.totalorder %s576_s25, %s739_s26  ;;  %p745_p2 = scmp.lt.s32.totalorder %s739_s26, %s739_s26 }
   0x8   :  { %710 = vmatpush3.bf16.msra.mxu0 %v709_v9  ;;  %v718_v26 = vpack.c.bf16 %v223_v25, %v222_v24  ;;  %v599_v29 = vld [vmem:[%s1019_s4] ss:$0 sm:$0xff]  ;;  %v484_v50 = vld [vmem:[%s1026_s11 + $0x10] sm:$0xff]  ;;  %v485_v51 = vld [vmem:[%s1026_s11 + $0x18] sm:$0xff] }
   0x9   :  { %717 = vmatprep.subr.bf16.mxu0 %v787_v3  ;;  %716 = vmatpush3.bf16.msra.mxu1 %v715_v14  ;;  %v395_v30 = vld [vmem:[%s1024_s9] sm:$0xff]  ;;  %v730_v52 = vpack.c.bf16 %v485_v51, %v484_v50  ;;  %p746_p3 = por %p745_p2, %p744_p1 }
   0xa   :  { %660 = vmatprep.subr.mxu1 %v789_v6  ;;  %v724_v35 = vpack.c.bf16 %v396_v31, %v395_v30  ;;  %v482_v38 = vld [vmem:[%s1026_s11] sm:$0xff] }
   0xb   :  { %650 = vmatmul.mubr.msk.f32.vlgmr.msra.gmra.mrb[0].mxu0 %vm60_vm1, %v48_v11  ;;  %v727_v40 = vpack.c.bf16 %v483_v39, %v482_v38  ;;  %v601_v41 = vld [vmem:[%s1021_s6] ss:$0 sm:$0xff]  ;;  %p747_p4 = pnand %p746_p3, %p740_p0 }
   0xc   :  { %671 = vmatprep.mubr.msk.f32.mxu0 %vm788_vm0, %v789_v6  ;;  %719 = vmatpush3.bf16.msra.mxu0 %v718_v26  ;;  %v604_v42 = vld [vmem:[%s1023_s8] ss:$0 sm:$0xff] }
   0xd   :  { %661 = vmatpush3.msra.mxu1 %v139_v15  ;;  %669 = vmatprep.subr.mxu0 %v789_v6  ;;  %v486_v53 = vld [vmem:[%s1026_s11 + $0x20] sm:$0xff] }
   0xe   :  { %720 = vmatprep.subr.bf16.mxu1 %v787_v3  ;;  %v607_v54 = vld [vmem:[%s1025_s10] ss:$0 sm:$0xff] }
  0x10   :  { %670 = vmatpush3.msk.msra.mxu0 %vm236_vm3, %v224_v28 }
  0x11   :  { %723 = vmatprep.subr.bf16.mxu0 %v787_v3 }
  0xde   :  { %v130_v19 = vpop.f32.mrb[0].mxu0 }
  0xdf   :  { %v131_v20 = vadd.f32 %v597_v16, %v130_v19  ;;  %v651_v21 = vpop.f32.mrb[1].mxu0 }
  0xe1   :  { %v134_v23 = vmax.f32 %v131_v20, 0.0 }
  0xe3   :  { %663 = vmatmul.mubr.msk.f32.vlgmr.msra.gmra.mrb[0].mxu1 %vm147_vm2, %v134_v23 }
  0xe4   :  { %722 = vmatpush3.bf16.msra.mxu1 %v721_v22  ;;  %680 = vmatprep.mubr.msk.f32.mxu1 %vm788_vm0, %v789_v6 }
  0xe5   :  { %678 = vmatprep.subr.mxu1 %v789_v6 }
  0xe8   :  { %679 = vmatpush3.msk.msra.mxu1 %vm236_vm3, %v313_v27 }
  0xe9   :  { %726 = vmatprep.subr.bf16.mxu1 %v787_v3 }
 0x1b6   :  { %v217_v32 = vpop.f32.mrb[0].mxu1 }
 0x1b7   :  { %v218_v33 = vadd.f32 %v599_v29, %v217_v32  ;;  %v664_v34 = vpop.f32.mrb[1].mxu1 }
 0x1b9   :  { %v221_v36 = vmax.f32 %v218_v33, 0.0 }
 0x1bb   :  { %672 = vmatmul.mubr.msk.f32.vlgmr.msra.gmra.mrb[2].mxu0 %vm232_vm4, %v221_v36  ;;  %681 = vmatmul.mubr.msk.f32.vlgmr.msra.gmra.mrb[2].mxu1 %vm232_vm4, %v221_v36 }
 0x1bc   :  { %725 = vmatpush3.bf16.msra.mxu0 %v724_v35  ;;  %689 = vmatprep.mubr.msk.f32.mxu0 %vm788_vm0, %v789_v6 }
 0x1bd   :  { %687 = vmatprep.subr.mxu0 %v789_v6  ;;  %702 = vmatprep.mubr.msk.f32.mxu1 %vm788_vm0, %v789_v6 }
 0x1be   :  { %728 = vmatpush3.bf16.msra.mxu1 %v727_v40 }
 0x1bf   :  { %729 = vmatprep.subr.bf16.mxu1 %v787_v3 }
 0x1c0   :  { %688 = vmatpush3.msk.msra.mxu0 %vm236_vm3, %v397_v37 }
 0x1c2   :  { %731 = vmatpush3.bf16.msra.mxu1 %v730_v52 }
 0x1c3   :  { %700 = vmatprep.subr.mxu1 %v789_v6 }
 0x1c6   :  { %701 = vmatpush3.msra.mxu1 %v486_v53 }
 0x28e   :  { %v306_v43 = vpop.f32.mrb[2].mxu0  ;;  %v390_v44 = vpop.f32.mrb[2].mxu1 }
 0x28f   :  { %v307_v45 = vadd.f32 %v601_v41, %v306_v43  ;;  %v391_v46 = vadd.f32 %v604_v42, %v390_v44  ;;  %v673_v47 = vpop.f32.mrb[3].mxu0  ;;  %v682_v48 = vpop.f32.mrb[3].mxu1 }
 0x291   :  { %310 = vst [vmem:[#allocation2] sm:$0xff] %v307_v45  ;;  %v394_v49 = vmax.f32 %v391_v46, 0.0 }
 0x293   :  { %690 = vmatmul.mubr.msk.f32.vlgmr.msra.gmra.mrb[4].mxu0 %vm232_vm4, %v394_v49 }
 0x366   :  { %v477_v55 = vpop.f32.mrb[4].mxu0 }
 0x367   :  { %v478_v56 = vadd.f32 %v607_v54, %v477_v55  ;;  %v691_v57 = vpop.f32.mrb[5].mxu0 }
 0x369   :  { %v481_v58 = vmax.f32 %v478_v56, 0.0 }
 0x36b   :  { %703 = vmatmul.mubr.msk.f32.vlgmr.msra.gmra.mrb[4].mxu1 %vm147_vm2, %v481_v58 }
 0x36c   :  { %750 = shalt.err (!%p747_p4)
}
 0x36d   :  { %s751_s10 = scalar_lea.hbm %s1028_s13, 128 }
 0x36e   :  { %p752_p5 = scmp.ne.s32.totalorder %s1028_s13, %s751_s10  ;;  %p755_p6 = scmp.lt.u32.totalorder %s751_s10, %s1028_s13 }
 0x370   :  { %p757_p7 = pnand %p755_p6, %p752_p5 }
 0x372   :  { %760 = shalt.err (!%p757_p7)
}
 0x373   :  { %578 = dma.vmem_to_hbm [thread:$0]  %s576_s25, 128, %s1028_s13, [#allocation3]   ;;  %v610_v59 = vld [vmem:[%s1027_s12] ss:$0 sm:$0xff] }
 0x374   :  { %s791_s16 = smov [#allocation4]  }
 0x375   :  { %s585_s17 = sshll.u32 %s791_s16, 4  ;;  %s586_s17 = int_to_ptr.vmem [resolvable:$true] %s585_s17 }
 0x376   :  { %s761_s18 = scalar_lea.vmem %s586_s17, 128  ;;  %p766_p9 = scmp.lt.s32.totalorder %s586_s17, %s586_s17 }
 0x377   :  { %p762_p8 = scmp.ne.s32.totalorder %s586_s17, %s761_s18  ;;  %p767_p10 = scmp.lt.s32.totalorder %s761_s18, %s761_s18 }
 0x379   :  { %p768_p11 = por %p767_p10, %p766_p9 }
 0x37b   :  { %p769_p12 = pnand %p768_p11, %p762_p8 }
 0x43e   :  { %v563_v60 = vpop.f32.mrb[4].mxu1 }
 0x43f   :  { %v564_v61 = vadd.f32 %v610_v59, %v563_v60  ;;  %v704_v62 = vpop.f32.mrb[5].mxu1 }
 0x441   :  { %737 = vtanh.f32 %v564_v61 }
 0x44b   :  { %v738_v63 = vpop.eup %737 }
 0x44c   :  { %568 = vst [vmem:[#allocation4] sm:$0xff] %v738_v63 }
 0x44d   :  { %772 = shalt.err (!%p769_p12)
}
 0x44e   :  { %s773_s12 = scalar_lea.hbm %s1029_s14, 128 }
 0x44f   :  { %p774_p13 = scmp.ne.s32.totalorder %s1029_s14, %s773_s12  ;;  %p777_p0 = scmp.lt.u32.totalorder %s773_s12, %s1029_s14 }
 0x451   :  { %p779_p1 = pnand %p777_p0, %p774_p13 }
 0x453   :  { %782 = shalt.err (!%p779_p1)
}
 0x454   :  { %588 = dma.vmem_to_hbm [thread:$0]  %s586_s17, 128, %s1029_s14, [#allocation5]  }
 0x455   :  { %783 = dma.done.wait [#allocation3], 128  }
 0x456   :  { %784 = vsyncadd [#allocation3], 4294967168 }
 0x457   :  { %785 = dma.done.wait [#allocation5], 128  }
 0x458   :  { %786 = vsyncadd [#allocation5], 4294967168 }
 0x459   :  { %595 = vsyncpa [#allocation3], 1 }
 0x45a   :  { %596 = vsyncpa [#allocation5], 1 }

</bundles_post_ra>
